<compile_context>
chip_gen: v5e
topology: v5e:2x2
jax: 0.10.0
libtpu: 0.0.40
codegen_flags: <defaults>
</compile_context>

<pallas_src>
import functools

import numpy as np
import jax
import jax.numpy as jnp
from jax.experimental import pallas as pl
from jax.experimental.pallas import tpu as pltpu


def se_kernel(x_ref, w_ref, o_ref, *, cr):
    """One batch-block per grid step.

    x_ref : (B_blk, C, Np)  channels on sublanes, Np = padded H*W on lanes
    w_ref : (C, 2*Cr)       [ fc1.weight.T * (1/N)  |  fc2.weight ]
    o_ref : (B_blk, C, Np)
    """
    x = x_ref[...]                                   # native dtype (no f32 upcast)
    w = w_ref[...].astype(jnp.float32)               # (C, 2*Cr), tiny
    w1t = w[:, :cr]                                  # (C, Cr)   fc1.weight.T / N
    w2 = w[:, cr:]                                   # (C, Cr)   fc2.weight

    # AdaptiveAvgPool2d(1): f32 spatial sum over lanes (1/N is folded into w1t,
    # so zero lane-padding contributes nothing).
    y = jnp.sum(x, axis=-1, keepdims=True, dtype=jnp.float32)          # (B_blk, C, 1)

    # fc1 (no bias) + ReLU — VPU broadcast multiply + sublane reduce, no MXU:
    #   h[b, j] = relu( sum_c (w1t[c, j] / N) * sum_n x[b, c, n] )
    h = jnp.maximum(jnp.sum(w1t[None] * y, axis=1, keepdims=True), 0.0)  # (B_blk, 1, Cr)

    # fc2 (no bias) + sigmoid — VPU broadcast multiply + lane reduce:
    #   g[b, c] = sigmoid( sum_j w2[c, j] * h[b, j] )
    g = jax.nn.sigmoid(jnp.sum(w2[None] * h, axis=-1, keepdims=True))    # (B_blk, C, 1)

    # Channel-wise gate in native dtype, lane-dense store.
    o_ref[...] = (x * g.astype(x.dtype)).astype(o_ref.dtype)


def _pick_block_batch(B, bytes_per_image):
    """~0.5-2 MiB x-blocks; prefer >=4 grid steps (2 per v7x TC), else >=2."""
    target = 2 << 20                                         # ~2 MiB per block
    blk = max(1, min(B, target // max(1, bytes_per_image)))
    quarter = pl.cdiv(B, 4)
    half = pl.cdiv(B, 2)
    if quarter * bytes_per_image >= (512 << 10):
        blk = min(blk, quarter)                              # >=4 steps, >=0.5 MiB blocks
    elif B > 1:
        blk = min(blk, half)                                 # at least 2 steps
    return max(1, blk)


def se_layer(x, fc1_weight, fc2_weight):
    """SELayer forward.

    x          : (B, C, H, W)  (PyTorch NCHW layout)
    fc1_weight : (Cr, C)       nn.Linear(C, C // reduction, bias=False).weight
    fc2_weight : (C, Cr)       nn.Linear(C // reduction, C, bias=False).weight
    returns    : (B, C, H, W)
    """
    B, C, H, W = x.shape
    N = H * W
    Cr = fc1_weight.shape[0]

    # Channel-major (free reshape from NCHW) + lane-dense spatial axis.
    x3 = x.reshape(B, C, N)
    Np = ((N + 127) // 128) * 128
    if Np != N:
        x3 = jnp.pad(x3, ((0, 0), (0, 0), (0, Np - N)))      # zeros: pooled sum unchanged

    # Batch blocking: ~0.5-2 MiB tiles, pad B to a multiple of the block.
    bytes_per_image = C * Np * x3.dtype.itemsize
    B_blk = _pick_block_batch(B, bytes_per_image)
    Bp = pl.cdiv(B, B_blk) * B_blk
    if Bp != B:
        x3 = jnp.pad(x3, ((0, Bp - B), (0, 0), (0, 0)))

    # Merge the two tiny FC weights into one operand; fold 1/N into fc1.weight.T.
    w = jnp.concatenate(
        [fc1_weight.T.astype(jnp.float32) * (1.0 / float(N)),
         fc2_weight.astype(jnp.float32)],
        axis=1,
    )                                                         # (C, 2*Cr)

    grid = (Bp // B_blk,)
    out = pl.pallas_call(
        functools.partial(se_kernel, cr=Cr),
        out_shape=jax.ShapeDtypeStruct((Bp, C, Np), x.dtype),
        grid_spec=pltpu.PrefetchScalarGridSpec(
            num_scalar_prefetch=0,
            grid=grid,
            in_specs=[
                pl.BlockSpec((B_blk, C, Np), lambda b: (b, 0, 0)),   # x batch-block
                pl.BlockSpec((C, 2 * Cr), lambda b: (0, 0)),         # merged weights
            ],
            out_specs=pl.BlockSpec((B_blk, C, Np), lambda b: (b, 0, 0)),
        ),
        compiler_params=pltpu.CompilerParams(
            dimension_semantics=("parallel",),                # batch steps -> both v7x TCs
            vmem_limit_bytes=32 * 1024 * 1024,                # safe on v5e/v6e/v7x
        ),
    )(x3, w)

    if Bp != B or Np != N:
        out = out[:B, :, :N]
    return out.reshape(B, C, H, W)


def reference(x, fc1_weight, fc2_weight):
    """Pure-JAX reference matching the PyTorch SELayer forward."""
    y = x.mean(axis=(2, 3))                                   # (B, C)
    h = jax.nn.relu(y @ fc1_weight.T)                         # (B, Cr)
    g = jax.nn.sigmoid(h @ fc2_weight.T)                      # (B, C)
    return x * g[:, :, None, None]


if __name__ == "__main__":
    key = jax.random.PRNGKey(0)
    kx, k1, k2 = jax.random.split(key, 3)

    # Small shapes consistent with the module (reduction=16 needs C >= 16).
    B, C, H, W = 2, 64, 16, 16
    reduction = 16
    Cr = C // reduction                                       # 4

    x = jax.random.normal(kx, (B, C, H, W), jnp.float32)
    fc1_w = jax.random.normal(k1, (Cr, C), jnp.float32) / np.sqrt(C)
    fc2_w = jax.random.normal(k2, (C, Cr), jnp.float32) / np.sqrt(Cr)

    out = se_layer(x, fc1_w, fc2_w)
    out = jax.block_until_ready(out)

    ref = reference(x, fc1_w, fc2_w)
    np.testing.assert_allclose(np.asarray(out), np.asarray(ref),
                               rtol=1e-5, atol=1e-5)
    print("KERNEL_OK")
</pallas_src>

<mosaic_0001>
module attributes {stable_mosaic.version = 11 : i64} {
  func.func @se_kernel(%arg0: i32, %arg1: memref<1x64x256xf32, #tpu.memory_space<vmem>>, %arg2: memref<64x8xf32, #tpu.memory_space<vmem>>, %arg3: memref<1x64x256xf32, #tpu.memory_space<vmem>>) attributes {dimension_semantics = [#tpu.dimension_semantics<parallel>], iteration_bounds = array<i64: 2>, scalar_prefetch = 0 : i64, scratch_operands = 0 : i64, tpu.core_type = #tpu.core_type<tc>, window_params = [{transform_indices = @transform_0, window_bounds = array<i64: 1, 64, 256>}, {pipeline_mode = #tpu.pipeline_mode<synchronous>, transform_indices = @transform_1, window_bounds = array<i64: 64, 8>}, {transform_indices = @transform_2, window_bounds = array<i64: 1, 64, 256>}]} {
    %c0 = arith.constant 0 : index
    %c0_0 = arith.constant 0 : index
    %c0_1 = arith.constant 0 : index
    %0 = vector.load %arg1[%c0, %c0_0, %c0_1] : memref<1x64x256xf32, #tpu.memory_space<vmem>>, vector<1x64x256xf32>
    %c0_2 = arith.constant 0 : index
    %c0_3 = arith.constant 0 : index
    %1 = vector.load %arg2[%c0_2, %c0_3] : memref<64x8xf32, #tpu.memory_space<vmem>>, vector<64x8xf32>
    %2 = vector.extract_strided_slice %1 {offsets = [0, 0], sizes = [64, 4], strides = [1, 1]} : vector<64x8xf32> to vector<64x4xf32>
    %3 = vector.extract_strided_slice %1 {offsets = [0, 4], sizes = [64, 4], strides = [1, 1]} : vector<64x8xf32> to vector<64x4xf32>
    %cst = arith.constant dense<0.000000e+00> : vector<1x64xf32>
    %4 = vector.multi_reduction <add>, %0, %cst [2] : vector<1x64x256xf32> to vector<1x64xf32>
    %5 = vector.shape_cast %4 : vector<1x64xf32> to vector<1x64x1xf32>
    %6 = vector.shape_cast %2 : vector<64x4xf32> to vector<1x64x4xf32>
    %7 = vector.broadcast %5 : vector<1x64x1xf32> to vector<1x64x4xf32>
    %8 = arith.mulf %6, %7 : vector<1x64x4xf32>
    %cst_4 = arith.constant dense<0.000000e+00> : vector<1x4xf32>
    %9 = vector.multi_reduction <add>, %8, %cst_4 [1] : vector<1x64x4xf32> to vector<1x4xf32>
    %10 = vector.shape_cast %9 : vector<1x4xf32> to vector<1x1x4xf32>
    %cst_5 = arith.constant 0.000000e+00 : f32
    %11 = vector.broadcast %cst_5 : f32 to vector<1x1x4xf32>
    %12 = arith.maximumf %10, %11 : vector<1x1x4xf32>
    %13 = vector.shape_cast %3 : vector<64x4xf32> to vector<1x64x4xf32>
    %14 = vector.broadcast %12 : vector<1x1x4xf32> to vector<1x64x4xf32>
    %15 = arith.mulf %13, %14 : vector<1x64x4xf32>
    %cst_6 = arith.constant dense<0.000000e+00> : vector<1x64xf32>
    %16 = vector.multi_reduction <add>, %15, %cst_6 [2] : vector<1x64x4xf32> to vector<1x64xf32>
    %17 = vector.shape_cast %16 : vector<1x64xf32> to vector<1x64x1xf32>
    %18 = arith.negf %17 : vector<1x64x1xf32>
    %19 = math.exp %18 : vector<1x64x1xf32>
    %cst_7 = arith.constant 1.000000e+00 : f32
    %20 = vector.broadcast %cst_7 : f32 to vector<1x64x1xf32>
    %21 = arith.addf %20, %19 : vector<1x64x1xf32>
    %22 = arith.divf %20, %21 : vector<1x64x1xf32>
    %23 = vector.broadcast %22 : vector<1x64x1xf32> to vector<1x64x256xf32>
    %24 = arith.mulf %0, %23 : vector<1x64x256xf32>
    %c0_8 = arith.constant 0 : index
    %c0_9 = arith.constant 0 : index
    %c0_10 = arith.constant 0 : index
    %25 = vector.load %arg3[%c0_8, %c0_9, %c0_10] : memref<1x64x256xf32, #tpu.memory_space<vmem>>, vector<1x64x256xf32>
    tpu.vector_store %arg3[%c0_8, %c0_9, %c0_10], %24 {strides = array<i32>} : memref<1x64x256xf32, #tpu.memory_space<vmem>>, vector<1x64x256xf32>,
    return
  }
  func.func @transform_0(%arg0: i32) -> (i32, i32, i32) {
    %c0_i32 = arith.constant 0 : i32
    %c0_i32_0 = arith.constant 0 : i32
    %c0_i32_1 = arith.constant 0 : i32
    return %arg0, %c0_i32, %c0_i32_0 : i32, i32, i32
  }
  func.func @transform_1(%arg0: i32) -> (i32, i32) {
    %c0_i32 = arith.constant 0 : i32
    %c0_i32_0 = arith.constant 0 : i32
    %c0_i32_1 = arith.constant 0 : i32
    return %c0_i32, %c0_i32_0 : i32, i32
  }
  func.func @transform_2(%arg0: i32) -> (i32, i32, i32) {
    %c0_i32 = arith.constant 0 : i32
    %c0_i32_0 = arith.constant 0 : i32
    %c0_i32_1 = arith.constant 0 : i32
    return %arg0, %c0_i32, %c0_i32_0 : i32, i32, i32
  }
}

</mosaic_0001>

<bundles_post_ra>
// kernel: tpu_custom_call.1
= control target key start
LH: loop header
LB: loop body
LE: loop exit
PB: predicated region body
PF: predicated region fallthrough
CT: control target
= control target key end

     0   :  { %7 = vsyncpa [#allocation3], 0  ;;  %s1106_s0 = inlined_call_operand.hbm [shape: f32[2,64,256], index: 0, kind: input, shape index: {}]   ;;  %s1107_s1 = inlined_call_operand.vmem [shape: f32[64,8], index: 1, kind: input, shape index: {}]   ;;  %s1108_s2 = inlined_call_operand.hbm [shape: f32[2,64,256], index: 2, kind: output, shape index: {}]  }
   0x1   :  { %9 = vsyncpa [#allocation3 + $0x1], 0 }
   0x2   :  { %10 = vsyncpa [#allocation4], 0 }
   0x3   :  { %12 = vsyncpa [#allocation4 + $0x1], 0  ;;  %s811_s9 = smov 0   ;;  %s813_s10 = smov 0  }
   0x4   :  { %s815_s11 = smov 0   ;;  %s817_s12 = smov 0  }
   0x5 LB: > { %s832_s13 = sadd.s32 4294967295, %s788_s12   ;;  %s584_s14 = sadd.s32 4294967294, %s788_s12   ;;  %s788_s12 = sphi %s817_s12, %s1120_s12   ;;  %s784_s11 = sphi %s815_s11, %s1119_s11   ;;  %s780_s10 = sphi %s813_s10, %s1118_s10   ;;  %s776_s9 = sphi %s811_s9, %s1117_s9  }
   0x6   : > { %s836_s15 = sadd.s32 1, %s788_s12   ;;  %s25_s16 = sadd.s32 1, %s784_s11 }
   0x7   : > { %s22_s17 = ssub.s32 %s788_s12, %s836_s15  ;;  %p32_p0 = scmp.ne.s32.totalorder %s784_s11, %s780_s10 }
   0x8   : > { %p23_p1 = scmp.eq.s32.totalorder %s22_s17, 0  ;;  %p33_p2 = scmp.eq.s32.totalorder %s788_s12, 0 }
   0x9   : > { %p38_p3 = scmp.ne.s32.totalorder %s780_s10, %s776_s9  ;;  %p39_p4 = scmp.eq.s32.totalorder %s832_s13, 0 }
   0xa   : > { %s848_s18 = scalar_select %p23_p1, %s784_s11, %s25_s16  }
   0xb   : > { %p850_p5 = por %p33_p2, %p32_p0  ;;  %p854_p6 = por %p39_p4, %p38_p3 }
   0xc   : > { %p83_p7 = scmp.eq.s32.totalorder %s832_s13, 1  ;;  %p89_p8 = scmp.eq.s32.totalorder %s584_s14, 1 }
   0xd   : > { %p620_p10 = scmp.lt.s32.totalorder %s788_s12, 2  ;;  %s112_s23 = sand.u32 1, %s784_s11  }
   0xe   : > { %p861_p11 = por %p83_p7, %p32_p0  ;;  %p865_p12 = por %p89_p8, %p38_p3 }
   0xf   : > { %s606_s24 = sshll.u32 %s788_s12, 7  ;;  %s587_s25 = sshll.u32 %s112_s23, 7 }
  0x10   : > { %s121_s28 = scalar_lea.hbm %s1106_s0, %s606_s24  ;;  %s116_s30 = scalar_lea.vmem [#allocation2], %s587_s25 }
  0x11   : > { %s122_s29 = sshll.u32 %s121_s28, 4  ;;  %s124_s3 = sshll.u32 %s116_s30, 4  ;;  %s123_s29 = int_to_ptr.hbm [resolvable:$true] %s122_s29  ;;  %s125_s3 = int_to_ptr.vmem [resolvable:$true] %s124_s3 }
  0x12   : > { %p876_p13 = pnand %p620_p10, %p850_p5  ;;  %p590_p0 = scmp.ge.s32.totalorder %s788_s12, 1 }
  0x13   : > { %p132_p1 = scmp.lt.s32.totalorder %s788_s12, 3  ;;  %s113_s5 = scalar_lea.sflag [#allocation3], %s112_s23 }
  0x14   : > { %s692_s6 = sshra.s32 %s123_s29, 4  ;;  %p696_p3 = pneg %p876_p13  ;;  %s693_s6 = int_to_ptr.hbm [resolvable:$true] %s692_s6 }
  0x15   : > { %s694_s7 = scalar_lea.hbm %s693_s6, 128  ;;  %s699_s16 = scalar_lea.hbm %s1106_s0, 256 }
  0x16   : > { %p695_p2 = scmp.ne.s32.totalorder %s693_s6, %s694_s7  ;;  %p700_p5 = scmp.lt.s32.totalorder %s693_s6, %s1106_s0 }
  0x17   : > { %p701_p8 = scmp.lt.s32.totalorder %s699_s16, %s694_s7 }
  0x18   : > { %p697_p4 = pnand %p696_p3, %p695_p2 }
  0x19   : > { %p702_p10 = por %p701_p8, %p700_p5 }
  0x1a   : > { %p698_p7 = pneg %p697_p4 }
  0x1c   : > { %p703_p9 = pnand %p702_p10, %p698_p7 }
  0x1e   : > { %706 = shalt.err (!%p703_p9)
}
  0x1f   : > { %s790_s23 = smov 256   ;;  %s791_s24 = smov 16  }
  0x20   : > { %615 = dma.hbm_to_vmem [thread:$0]  (!%p876_p13), %s123_s29, 2048, %s125_s3, %s113_s5, %s790_s23, %s790_s23, %s791_s24  }
  0x21   : > { %p133_p2 = pnand %p590_p0, %p132_p1 }
  0x22   : > { %s897_s25 = sand.u32 (!%p133_p2), 1, %s780_s10  }
  0x23   : > { %136 = sbr.rel (%p133_p2) target bundleno = 579 (0x243), region = 28  ;;  %s591_s26 = sshll.u32 (!%p133_p2), %s897_s25, 7 }
  0x24   : > { %s139_s27 = scalar_lea.sflag (!%p133_p2), [#allocation3], %s897_s25  ;;  %s142_s28 = scalar_lea.vmem (!%p133_p2), [#allocation2], %s591_s26 }
  0x28   : > { %767 = dma.done.wait (%p854_p6), %s139_s27, 2048  }
  0x29   : > { %769 = vsyncadd (%p854_p6), %s139_s27, 4294965248  ;;  %v907_v0 = vld [vmem:[%s142_s28] sm:$0xff]  ;;  %v909_v1 = vld [vmem:[%s142_s28 + $0x8] sm:$0xff]  ;;  %vm220_vm0 = vcmask 31744   ;;  %s793_s20 = smov 124   ;;  %s999_s29 = scalar_lea.vmem [#allocation5], %s591_s26 }
  0x2a   : > { %v911_v2 = vld [vmem:[%s142_s28 + $0x20] sm:$0xff]  ;;  %v188_v3 = vadd.f32 %v909_v1, %v907_v0  ;;  %v915_v4 = vld [vmem:[%s142_s28 + $0x28] sm:$0xff]  ;;  %v925_v9 = vld [vmem:[%s142_s28 + $0x10] sm:$0xff]  ;;  %s607_s26 = sshll.u32 %s832_s13, 7  ;;  %s508_s4 = sshll.u32 %s999_s29, 4  ;;  %s509_s4 = int_to_ptr.vmem [resolvable:$true] %s508_s4 }
  0x2b   : > { %v917_v5 = vld [vmem:[%s142_s28 + $0x40] sm:$0xff]  ;;  %v919_v6 = vld [vmem:[%s142_s28 + $0x48] sm:$0xff]  ;;  %v194_v7 = vadd.f32 %v915_v4, %v911_v2  ;;  %v927_v10 = vld [vmem:[%s142_s28 + $0x18] sm:$0xff]  ;;  %s507_s13 = scalar_lea.hbm %s1108_s2, %s607_s26  ;;  %s496_s6 = scalar_lea.sflag [#allocation4], %s897_s25 }
  0x2c   : > { %v200_v8 = vadd.f32 %v919_v6, %v917_v5  ;;  %189 = vadd.xlane.f32.xlu0 %v188_v3  ;;  %v929_v11 = vld [vmem:[%s142_s28 + $0x30] sm:$0xff]  ;;  %v931_v12 = vld [vmem:[%s142_s28 + $0x38] sm:$0xff]  ;;  %v191_v15 = vadd.f32 %v927_v10, %v925_v9  ;;  %v943_v18 = vld [vmem:[%s142_s28 + $0x60] sm:$0xff]  ;;  %s510_s5 = sshll.u32 %s507_s13, 4  ;;  %s742_s17 = scalar_lea.hbm %s1108_s2, 256  ;;  %s511_s5 = int_to_ptr.hbm [resolvable:$true] %s510_s5 }
  0x2d   : > { %195 = vadd.xlane.f32.xlu1 %v194_v7  ;;  %v933_v13 = vld [vmem:[%s142_s28 + $0x50] sm:$0xff]  ;;  %v935_v14 = vld [vmem:[%s142_s28 + $0x58] sm:$0xff]  ;;  %v197_v16 = vadd.f32 %v931_v12, %v929_v11  ;;  %v945_v19 = vld [vmem:[%s142_s28 + $0x68] sm:$0xff]  ;;  %s736_s7 = sshra.s32 %s511_s5, 4  ;;  %s737_s7 = int_to_ptr.hbm [resolvable:$true] %s736_s7 }
  0x2e   : > { %201 = vadd.xlane.f32.xlu2 %v200_v8  ;;  %v203_v17 = vadd.f32 %v935_v14, %v933_v13  ;;  %v947_v20 = vld [vmem:[%s142_s28 + $0x70] sm:$0xff]  ;;  %v949_v21 = vld [vmem:[%s142_s28 + $0x78] sm:$0xff]  ;;  %v206_v22 = vadd.f32 %v945_v19, %v943_v18  ;;  %v180_v27 = vld [vmem:[%s1107_s1] sm:$0xff]  ;;  %s792_s28 = smov 4   ;;  %s738_s8 = scalar_lea.hbm %s737_s7, 128 }
  0x2f   : > { %v209_v23 = vadd.f32 %v949_v21, %v947_v20  ;;  %v182_v28 = vld [vmem:[%s1107_s1 + $0x10] sm:$0xff]  ;;  %v181_v29 = vld [vmem:[%s1107_s1 + $0x8] sm:$0xff]  ;;  %v183_v31 = vld [vmem:[%s1107_s1 + $0x18] sm:$0xff]  ;;  %p739_p6 = scmp.ne.s32.totalorder %s737_s7, %s738_s8  ;;  %p743_p0 = scmp.lt.s32.totalorder %s737_s7, %s1108_s2 }
  0x30   : > { %v184_v36 = vld [vmem:[%s1107_s1 + $0x20] sm:$0xff]  ;;  %v185_v38 = vld [vmem:[%s1107_s1 + $0x28] sm:$0xff]  ;;  %v186_v48 = vld [vmem:[%s1107_s1 + $0x30] sm:$0xff]  ;;  %p744_p1 = scmp.lt.s32.totalorder %s742_s17, %s738_s8 }
  0x31   : > { %v187_v49 = vld [vmem:[%s1107_s1 + $0x38] sm:$0xff]  ;;  %p740_p9 = pnand %p739_p6, %p861_p11 }
  0x32   : > { %p745_p3 = por %p744_p1, %p743_p0 }
  0x33   : > { %p741_p13 = pneg %p740_p9 }
  0x34   : > { %192 = vadd.xlane.f32.xlu0 %v191_v15 }
  0x35   : > { %198 = vadd.xlane.f32.xlu1 %v197_v16  ;;  %p746_p4 = pnand %p745_p3, %p741_p13 }
  0x36   : > { %204 = vadd.xlane.f32.xlu2 %v203_v17 }
  0x3c   : > { %207 = vadd.xlane.f32.xlu0 %v206_v22 }
  0x3d   : > { %210 = vadd.xlane.f32.xlu1 %v209_v23 }
  0x9f   : > { %v190_v24 = vpop.xlane.xlu0 %189 }
  0xa0   : > { %v196_v25 = vpop.xlane.xlu1 %195  ;;  %v212_v30 = vmul.f32 %v190_v24, %v180_v27 }
  0xa1   : > { %v202_v26 = vpop.xlane.xlu2 %201  ;;  %v214_v33 = vmul.f32 %v196_v25, %v182_v28 }
  0xa2   : > { %v221_v40 = vsel %vm220_vm0, %v212_v30, 0.0  ;;  %v216_v44 = vmul.f32 %v202_v26, %v184_v36 }
  0xa3   : > { %v224_v43 = vsel %vm220_vm0, %v214_v33, 0.0 }
  0xa4   : > { %v228_v52 = vsel %vm220_vm0, %v216_v44, 0.0 }
  0xa7   : > { %v193_v32 = vpop.xlane.xlu0 %192 }
  0xa8   : > { %v213_v34 = vmul.f32 %v193_v32, %v181_v29  ;;  %v199_v35 = vpop.xlane.xlu1 %198 }
  0xa9   : > { %v215_v37 = vmul.f32 %v199_v35, %v183_v31  ;;  %v205_v39 = vpop.xlane.xlu2 %204 }
  0xaa   : > { %v222_v41 = vsel %vm220_vm0, %v213_v34, 0.0  ;;  %v217_v46 = vmul.f32 %v205_v39, %v185_v38 }
  0xab   : > { %v223_v42 = vadd.f32 %v222_v41, %v221_v40  ;;  %v226_v45 = vsel %vm220_vm0, %v215_v37, 0.0 }
  0xac   : > { %v230_v53 = vsel %vm220_vm0, %v217_v46, 0.0 }
  0xad   : > { %v225_v47 = vadd.f32 %v224_v43, %v223_v42 }
  0xaf   : > { %v227_v50 = vadd.f32 %v226_v45, %v225_v47  ;;  %v208_v51 = vpop.xlane.xlu0 %207 }
  0xb0   : > { %v218_v54 = vmul.f32 %v208_v51, %v186_v48  ;;  %v211_v55 = vpop.xlane.xlu1 %210 }
  0xb1   : > { %v229_v56 = vadd.f32 %v228_v52, %v227_v50  ;;  %v219_v57 = vmul.f32 %v211_v55, %v187_v49 }
  0xb2   : > { %v232_v58 = vsel %vm220_vm0, %v218_v54, 0.0 }
  0xb3   : > { %v231_v59 = vadd.f32 %v230_v53, %v229_v56  ;;  %v234_v60 = vsel %vm220_vm0, %v219_v57, 0.0 }
  0xb5   : > { %v233_v61 = vadd.f32 %v232_v58, %v231_v59 }
  0xb7   : > { %v235_v62 = vadd.f32 %v234_v60, %v233_v61 }
  0xb9   : > { %v236_v63 = vrot.slane %v235_v62, 4 }
  0xbb   : > { %v237_v3 = vadd.f32 %v236_v63, %v235_v62 }
  0xbd   : > { %v238_v7 = vrot.slane %v237_v3, 2 }
  0xbf   : > { %v239_v8 = vadd.f32 %v238_v7, %v237_v3 }
  0xc1   : > { %v240_v15 = vrot.slane %v239_v8, 1 }
  0xc3   : > { %v241_v16 = vadd.f32 %v240_v15, %v239_v8 }
  0xc5   : > { %v242_v17 = vmax.f32 %v241_v16, 0.0 }
  0xc7   : > { %244 = vrot.lane.b32.xlu2 %v242_v17, %s792_s28 }
 0x121   : > { %v245_v22 = vpop.permute.xlu2 %244 }
 0x122   : > { %v249_v23 = vmul.f32 %v245_v22, %v182_v28  ;;  %v248_v24 = vmul.f32 %v245_v22, %v181_v29  ;;  %v247_v25 = vmul.f32 %v245_v22, %v180_v27  ;;  %v251_v26 = vmul.f32 %v245_v22, %v184_v36 }
 0x123   : > { %v252_v30 = vmul.f32 %v245_v22, %v185_v38  ;;  %v250_v32 = vmul.f32 %v245_v22, %v183_v31  ;;  %v254_v33 = vmul.f32 %v245_v22, %v187_v49  ;;  %v253_v34 = vmul.f32 %v245_v22, %v186_v48 }
 0x124   : > { %267 = vrot.lane.b32.xlu2 %v249_v23, %s793_s20  ;;  %265 = vrot.lane.b32.xlu1 %v248_v24, %s793_s20 }
 0x125   : > { %263 = vrot.lane.b32.xlu0 %v247_v25, %s793_s20 }
 0x12c   : > { %271 = vrot.lane.b32.xlu2 %v251_v26, %s793_s20  ;;  %273 = vrot.lane.b32.xlu1 %v252_v30, %s793_s20 }
 0x12d   : > { %269 = vrot.lane.b32.xlu0 %v250_v32, %s793_s20 }
 0x134   : > { %277 = vrot.lane.b32.xlu2 %v254_v33, %s793_s20 }
 0x135   : > { %275 = vrot.lane.b32.xlu0 %v253_v34, %s793_s20 }
 0x17e   : > { %v268_v35 = vpop.permute.xlu2 %267 }
 0x17f   : > { %v293_v37 = vsel %vm220_vm0, %v268_v35, 0.0 }
 0x180   : > { %294 = vadd.xlane.f32.xlu2 %v293_v37 }
 0x186   : > { %v272_v31 = vpop.permute.xlu2 %271 }
 0x187   : > { %v299_v41 = vsel %vm220_vm0, %v272_v31, 0.0 }
 0x18e   : > { %v278_v43 = vpop.permute.xlu2 %277 }
 0x18f   : > { %v308_v45 = vsel %vm220_vm0, %v278_v43, 0.0 }
 0x196   : > { %v266_v28 = vpop.permute.xlu1 %265 }
 0x197   : > { %v264_v27 = vpop.permute.xlu0 %263  ;;  %v290_v29 = vsel %vm220_vm0, %v266_v28, 0.0 }
 0x198   : > { %291 = vadd.xlane.f32.xlu0 %v290_v29  ;;  %v287_v36 = vsel %vm220_vm0, %v264_v27, 0.0 }
 0x199   : > { %288 = vadd.xlane.f32.xlu1 %v287_v36 }
 0x19e   : > { %v274_v38 = vpop.permute.xlu1 %273 }
 0x19f   : > { %v270_v39 = vpop.permute.xlu0 %269  ;;  %v302_v40 = vsel %vm220_vm0, %v274_v38, 0.0 }
 0x1a0   : > { %303 = vadd.xlane.f32.xlu2 %v302_v40  ;;  %300 = vadd.xlane.f32.xlu0 %v299_v41  ;;  %v296_v42 = vsel %vm220_vm0, %v270_v39, 0.0 }
 0x1a1   : > { %297 = vadd.xlane.f32.xlu1 %v296_v42 }
 0x1a7   : > { %v276_v44 = vpop.permute.xlu0 %275 }
 0x1a8   : > { %309 = vadd.xlane.f32.xlu0 %v308_v45  ;;  %v305_v46 = vsel %vm220_vm0, %v276_v44, 0.0 }
 0x1a9   : > { %306 = vadd.xlane.f32.xlu1 %v305_v46 }
 0x1f3   : > { %v295_v47 = vpop.xlane.xlu2 %294 }
 0x1f4   : > { %v595_v48 = vmul.f32 -1.442695, %v295_v47 }
 0x1f6   : > { %660 = vpow2.f32 %v595_v48 }
 0x1fc   : > { %v661_v49 = vpop.eup %660 }
 0x1fd   : > { %v337_v50 = vadd.f32 1.0, %v661_v49 }
 0x1ff   : > { %662 = vrcp.f32 %v337_v50  ;;  %v384_v54 = vand.u32 2147483648, %v337_v50  ;;  %v382_v56 = vand.u32 2147483647, %v337_v50  ;;  %vm378_vm2 = vweird.f32 %v337_v50 }
 0x201   : > { %v385_v61 = vor.u32 1.1754944e-38, %v384_v54  ;;  %vm383_vm4 = vcmp.eq.f32.partialorder %v382_v56, 8.507059e+37 }
 0x205   : > { %v663_v51 = vpop.eup %662 }
 0x206   : > { %v374_v52 = vmul.f32 %v663_v51, %v337_v50  ;;  %vm379_vm1 = vweird.f32 %v663_v51 }
 0x207   : > { %vm380_vm3 = vmor %vm378_vm2, %vm379_vm1 }
 0x208   : > { %v375_v53 = vsub.f32 1.0, %v374_v52 }
 0x20a   : > { %v376_v55 = vmul.f32 %v663_v51, %v375_v53 }
 0x20b   : > { %v292_v57 = vpop.xlane.xlu0 %291 }
 0x20c   : > { %v377_v58 = vadd.f32 %v663_v51, %v376_v55  ;;  %v289_v59 = vpop.xlane.xlu1 %288  ;;  %v594_v60 = vmul.f32 -1.442695, %v292_v57 }
 0x20d   : > { %v593_v62 = vmul.f32 -1.442695, %v289_v59 }
 0x20e   : > { %v381_v63 = vsel %vm380_vm3, %v663_v51, %v377_v58  ;;  %664 = vpow2.f32 %v594_v60 }
 0x20f   : > { %v386_v3 = vsel %vm383_vm4, %v385_v61, %v381_v63  ;;  %666 = vpow2.f32 %v593_v62 }
 0x210   : > { %v467_v7 = vmul.f32 %v386_v3, %v911_v2  ;;  %v468_v8 = vmul.f32 %v386_v3, %v915_v4 }
 0x212   : > { %483 = vst [vmem:[%s999_s29 + $0x20] sm:$0xff] %v467_v7 }
 0x213   : > { %484 = vst [vmem:[%s999_s29 + $0x28] sm:$0xff] %v468_v8  ;;  %v304_v15 = vpop.xlane.xlu2 %303  ;;  %v301_v16 = vpop.xlane.xlu0 %300 }
 0x214   : > { %v665_v17 = vpop.eup %664  ;;  %v598_v22 = vmul.f32 -1.442695, %v304_v15  ;;  %v298_v23 = vpop.xlane.xlu1 %297  ;;  %v597_v2 = vmul.f32 -1.442695, %v301_v16 }
 0x215   : > { %v667_v24 = vpop.eup %666  ;;  %v336_v25 = vadd.f32 1.0, %v665_v17  ;;  %v596_v26 = vmul.f32 -1.442695, %v298_v23 }
 0x216   : > { %v335_v30 = vadd.f32 1.0, %v667_v24  ;;  %668 = vpow2.f32 %v598_v22 }
 0x217   : > { %670 = vrcp.f32 %v336_v25  ;;  %v367_v40 = vand.u32 2147483647, %v336_v25  ;;  %v369_v41 = vand.u32 2147483648, %v336_v25  ;;  %vm363_vm7 = vweird.f32 %v336_v25 }
 0x218   : > { %672 = vrcp.f32 %v335_v30  ;;  %v352_v44 = vand.u32 2147483647, %v335_v30  ;;  %v354_v46 = vand.u32 2147483648, %v335_v30  ;;  %vm348_vm8 = vweird.f32 %v335_v30 }
 0x219   : > { %674 = vpow2.f32 %v596_v26  ;;  %vm368_vm10 = vcmp.eq.f32.partialorder %v367_v40, 8.507059e+37  ;;  %v370_v53 = vor.u32 1.1754944e-38, %v369_v41 }
 0x21a   : > { %676 = vpow2.f32 %v597_v2  ;;  %vm353_vm12 = vcmp.eq.f32.partialorder %v352_v44, 8.507059e+37  ;;  %v355_v54 = vor.u32 1.1754944e-38, %v354_v46 }
 0x21b   : > { %v310_v4 = vpop.xlane.xlu0 %309 }
 0x21c   : > { %v669_v32 = vpop.eup %668  ;;  %v307_v33 = vpop.xlane.xlu1 %306  ;;  %v600_v34 = vmul.f32 -1.442695, %v310_v4 }
 0x21d   : > { %v671_v35 = vpop.eup %670  ;;  %v1003_v37 = vadd.f32 1.0, %v669_v32  ;;  %v599_v28 = vmul.f32 -1.442695, %v307_v33 }
 0x21e   : > { %v673_v27 = vpop.eup %672  ;;  %v359_v29 = vmul.f32 %v671_v35, %v336_v25  ;;  %678 = vpow2.f32 %v600_v34  ;;  %vm364_vm5 = vweird.f32 %v671_v35 }
 0x21f   : > { %v675_v36 = vpop.eup %674  ;;  %v344_v31 = vmul.f32 %v673_v27, %v335_v30  ;;  %680 = vrcp.f32 %v1003_v37  ;;  %vm349_vm6 = vweird.f32 %v673_v27  ;;  %vm365_vm9 = vmor %vm363_vm7, %vm364_vm5  ;;  %v427_v60 = vand.u32 2147483647, %v1003_v37 }
 0x220   : > { %v677_v38 = vpop.eup %676  ;;  %v360_v39 = vsub.f32 1.0, %v359_v29  ;;  %v1006_v42 = vadd.f32 1.0, %v675_v36  ;;  %682 = vpow2.f32 %v599_v28  ;;  %vm350_vm11 = vmor %vm348_vm8, %vm349_vm6  ;;  %v429_v8 = vand.u32 2147483648, %v1003_v37 }
 0x221   : > { %v345_v43 = vsub.f32 1.0, %v344_v31  ;;  %v1008_v45 = vadd.f32 1.0, %v677_v38  ;;  %vm423_vm14 = vweird.f32 %v1003_v37  ;;  %vm1028_vm15 = vcmp.eq.f32.partialorder %v427_v60, 8.507059e+37 }
 0x222   : > { %v361_v47 = vmul.f32 %v671_v35, %v360_v39  ;;  %684 = vrcp.f32 %v1006_v42  ;;  %v430_v26 = vor.u32 1.1754944e-38, %v429_v8  ;;  %v399_v30 = vand.u32 2147483648, %v1006_v42 }
 0x223   : > { %v346_v48 = vmul.f32 %v673_v27, %v345_v43  ;;  %686 = vrcp.f32 %v1008_v45  ;;  %v397_v4 = vand.u32 2147483647, %v1006_v42  ;;  %vm393_vm2 = vweird.f32 %v1006_v42 }
 0x224   : > { %v679_v49 = vpop.eup %678  ;;  %v362_v50 = vadd.f32 %v671_v35, %v361_v47  ;;  %v412_v34 = vand.u32 2147483647, %v1008_v45  ;;  %v400_v38 = vor.u32 1.1754944e-38, %v399_v30  ;;  %vm408_vm5 = vweird.f32 %v1008_v45 }
 0x225   : > { %v681_v51 = vpop.eup %680  ;;  %v347_v52 = vadd.f32 %v673_v27, %v346_v48  ;;  %v1014_v61 = vadd.f32 1.0, %v679_v49  ;;  %vm398_vm6 = vcmp.eq.f32.partialorder %v397_v4, 8.507059e+37 }
 0x226   : > { %v366_v55 = vsel %vm365_vm9, %v671_v35, %v362_v50  ;;  %v419_v56 = vmul.f32 %v681_v51, %v1003_v37  ;;  %v683_v57 = vpop.eup %682  ;;  %vm424_vm13 = vweird.f32 %v681_v51  ;;  %v414_v35 = vand.u32 2147483648, %v1008_v45 }
 0x227   : > { %v351_v58 = vsel %vm350_vm11, %v673_v27, %v347_v52  ;;  %v371_v59 = vsel %vm368_vm10, %v370_v53, %v366_v55  ;;  %v1023_v25 = vadd.f32 1.0, %v683_v57  ;;  %688 = vrcp.f32 %v1014_v61  ;;  %vm425_vm0 = vmor %vm423_vm14, %vm424_vm13 }
 0x228   : > { %v685_v62 = vpop.eup %684  ;;  %v356_v63 = vsel %vm353_vm12, %v355_v54, %v351_v58  ;;  %v465_v3 = vmul.f32 %v371_v59, %v925_v9  ;;  %v420_v7 = vsub.f32 1.0, %v419_v56  ;;  %v466_v17 = vmul.f32 %v371_v59, %v927_v10 }
 0x229   : > { %v463_v15 = vmul.f32 %v356_v63, %v907_v0  ;;  %v464_v16 = vmul.f32 %v356_v63, %v909_v1  ;;  %v389_v22 = vmul.f32 %v685_v62, %v1006_v42  ;;  %v687_v23 = vpop.eup %686  ;;  %690 = vrcp.f32 %v1023_v25 }
 0x22a   : > { %481 = vst [vmem:[%s999_s29 + $0x10] sm:$0xff] %v465_v3  ;;  %v421_v24 = vmul.f32 %v681_v51, %v420_v7  ;;  %v404_v9 = vmul.f32 %v687_v23, %v1008_v45  ;;  %vm394_vm1 = vweird.f32 %v685_v62  ;;  %vm409_vm3 = vweird.f32 %v687_v23 }
 0x22b   : > { %479 = vst [vmem:[%s999_s29] sm:$0xff] %v463_v15  ;;  %v390_v1 = vsub.f32 1.0, %v389_v22  ;;  %vm395_vm4 = vmor %vm393_vm2, %vm394_vm1  ;;  %vm413_vm8 = vcmp.eq.f32.partialorder %v412_v34, 8.507059e+37  ;;  %v459_v52 = vand.u32 2147483648, %v1014_v61  ;;  %v457_v53 = vand.u32 2147483647, %v1014_v61 }
 0x22c   : > { %480 = vst [vmem:[%s999_s29 + $0x8] sm:$0xff] %v464_v16  ;;  %v422_v10 = vadd.f32 %v681_v51, %v421_v24  ;;  %v405_v32 = vsub.f32 1.0, %v404_v9  ;;  %vm410_vm7 = vmor %vm408_vm5, %vm409_vm3  ;;  %v442_v55 = vand.u32 2147483647, %v1023_v25  ;;  %vm453_vm11 = vweird.f32 %v1014_v61 }
 0x22d   : > { %482 = vst [vmem:[%s999_s29 + $0x18] sm:$0xff] %v466_v17  ;;  %v391_v2 = vmul.f32 %v685_v62, %v390_v1  ;;  %v689_v29 = vpop.eup %688  ;;  %vm438_vm12 = vweird.f32 %v1023_v25  ;;  %v460_v56 = vor.u32 1.1754944e-38, %v459_v52 }
 0x22e   : > { %v426_v33 = vsel %vm425_vm0, %v681_v51, %v422_v10  ;;  %v406_v27 = vmul.f32 %v687_v23, %v405_v32  ;;  %v449_v41 = vmul.f32 %v689_v29, %v1014_v61  ;;  %vm454_vm9 = vweird.f32 %v689_v29 }
 0x22f   : > { %v431_v37 = vsel %vm1028_vm15, %v430_v26, %v426_v33  ;;  %v392_v28 = vadd.f32 %v685_v62, %v391_v2  ;;  %v691_v42 = vpop.eup %690  ;;  %vm455_vm13 = vmor %vm453_vm11, %vm454_vm9  ;;  %vm458_vm15 = vcmp.eq.f32.partialorder %v457_v53, 8.507059e+37  ;;  %vm443_vm0 = vcmp.eq.f32.partialorder %v442_v55, 8.507059e+37 }
 0x230   : > { %v473_v36 = vmul.f32 %v431_v37, %v933_v13  ;;  %v474_v31 = vmul.f32 %v431_v37, %v935_v14  ;;  %v407_v40 = vadd.f32 %v687_v23, %v406_v27  ;;  %v415_v13 = vor.u32 1.1754944e-38, %v414_v35 }
 0x231   : > { %v396_v39 = vsel %vm395_vm4, %v685_v62, %v392_v28  ;;  %v434_v46 = vmul.f32 %v691_v42, %v1023_v25  ;;  %v450_v48 = vsub.f32 1.0, %v449_v41  ;;  %vm439_vm10 = vweird.f32 %v691_v42 }
 0x232   : > { %489 = vst [vmem:[%s999_s29 + $0x50] sm:$0xff] %v473_v36  ;;  %v401_v43 = vsel %vm398_vm6, %v400_v38, %v396_v39  ;;  %v411_v45 = vsel %vm410_vm7, %v687_v23, %v407_v40  ;;  %vm440_vm14 = vmor %vm438_vm12, %vm439_vm10 }
 0x233   : > { %490 = vst [vmem:[%s999_s29 + $0x58] sm:$0xff] %v474_v31  ;;  %v469_v14 = vmul.f32 %v401_v43, %v929_v11  ;;  %v470_v44 = vmul.f32 %v401_v43, %v931_v12  ;;  %v416_v47 = vsel %vm413_vm8, %v415_v13, %v411_v45  ;;  %v435_v51 = vsub.f32 1.0, %v434_v46 }
 0x234   : > { %v471_v49 = vmul.f32 %v416_v47, %v917_v5  ;;  %v472_v50 = vmul.f32 %v416_v47, %v919_v6  ;;  %v444_v11 = vand.u32 2147483648, %v1023_v25  ;;  %v451_v12 = vmul.f32 %v689_v29, %v450_v48 }
 0x235   : > { %485 = vst [vmem:[%s999_s29 + $0x30] sm:$0xff] %v469_v14  ;;  %v436_v54 = vmul.f32 %v691_v42, %v435_v51 }
 0x236   : > { %486 = vst [vmem:[%s999_s29 + $0x38] sm:$0xff] %v470_v44  ;;  %v452_v5 = vadd.f32 %v689_v29, %v451_v12  ;;  %v445_v57 = vor.u32 1.1754944e-38, %v444_v11 }
 0x237   : > { %487 = vst [vmem:[%s999_s29 + $0x40] sm:$0xff] %v471_v49  ;;  %v437_v6 = vadd.f32 %v691_v42, %v436_v54 }
 0x238   : > { %488 = vst [vmem:[%s999_s29 + $0x48] sm:$0xff] %v472_v50  ;;  %v456_v58 = vsel %vm455_vm13, %v689_v29, %v452_v5 }
 0x239   : > { %v441_v59 = vsel %vm440_vm14, %v691_v42, %v437_v6  ;;  %v461_v60 = vsel %vm458_vm15, %v460_v56, %v456_v58 }
 0x23a   : > { %v446_v61 = vsel %vm443_vm0, %v445_v57, %v441_v59  ;;  %v477_v62 = vmul.f32 %v461_v60, %v947_v20  ;;  %v478_v7 = vmul.f32 %v461_v60, %v949_v21 }
 0x23b   : > { %v475_v63 = vmul.f32 %v446_v61, %v943_v18  ;;  %v476_v3 = vmul.f32 %v446_v61, %v945_v19 }
 0x23c   : > { %493 = vst [vmem:[%s999_s29 + $0x70] sm:$0xff] %v477_v62 }
 0x23d   : > { %491 = vst [vmem:[%s999_s29 + $0x60] sm:$0xff] %v475_v63 }
 0x23e   : > { %492 = vst [vmem:[%s999_s29 + $0x68] sm:$0xff] %v476_v3 }
 0x23f   : > { %494 = vst [vmem:[%s999_s29 + $0x78] sm:$0xff] %v478_v7 }
 0x240   : > { %749 = shalt.err (!%p746_p4)
}
 0x241   : > { %s794_s25 = smov 256   ;;  %s795_s24 = smov 16  }
 0x242   : > { %610 = dma.vmem_to_hbm [thread:$0]  (%p861_p11), %s509_s4, 2048, %s511_s5, %s496_s6, %s794_s25, %s794_s25, %s795_s24  }
 0x243 PF: > { %s525_s27 = sand.u32 1, %s776_s9   ;;  %p1116_p7 = scmp.ge.s32.totalorder %s788_s12, 2 }
 0x244   : > { %s526_s28 = scalar_lea.sflag [#allocation4], %s525_s27 }
 0x245   : > { %p617_p5 = pnand %p1116_p7, %p865_p12 }
 0x247   : > { %p618_p8 = pneg %p617_p5 }
 0x249   : > { %771 = dma.done.wait (%p618_p8), %s526_s28, 2048  }
 0x24a   : > { %773 = vsyncadd (%p618_p8), %s526_s28, 4294965248  ;;  %p15_p10 = scmp.ge.s32.totalorder %s836_s15, 4   ;;  %s1117_s9 = smov %s780_s10 }
 0x24b   : > { %s1118_s10 = smov %s784_s11  ;;  %s1119_s11 = smov %s848_s18 }
 0x24c   : > { %s1120_s12 = smov %s836_s15  ;;  %17 = sbr.rel (!%p15_p10) target bundleno = 5 (0x5), region = 73 }
 0x251   :  { %532 = vsyncpa [#allocation3], 1 }
 0x252   :  { %534 = vsyncpa [#allocation3 + $0x1], 1 }
 0x253   :  { %535 = vsyncpa [#allocation4], 1 }
 0x254   :  { %537 = vsyncpa [#allocation4 + $0x1], 1 }

</bundles_post_ra>
